<compile_context>
chip_gen: v7x
topology: tpu7x:2x2x1
jax: 0.10.0
libtpu: 0.0.40
codegen_flags: <defaults>
</compile_context>

<pallas_src>
import jax
import jax.numpy as jnp
from jax.experimental import pallas as pl
from jax.experimental.pallas import tpu as pltpu

F1 = 32            # out channels
CHANS = 6          # kernel / slice height
KW = 8             # kernel width == width stride
KDIM = CHANS * KW  # 48 = im2col patch length
NEG_SLOPE = 0.01   # F.leaky_relu default negative slope
MAX_TILE = 8192    # lane-tile cap: (48+32)*8192*4 B ~= 2.5 MiB/block, ~5 MiB double-buffered


def _conv_mm_kernel(p_ref, w_ref, b_ref, o_ref):
    # p_ref: (1, 48, TW)  w_ref: (32, 48)  b_ref: (32, 1)  o_ref: (1, 32, TW)
    acc = jax.lax.dot_general(
        w_ref[...], p_ref[0],
        dimension_numbers=(((1,), (0,)), ((), ())),
        preferred_element_type=jnp.float32,
    )                                        # (32, TW) -- lane-dense along TW
    acc = acc + b_ref[...]                   # (32, 1) broadcasts over lanes
    # select-free leaky_relu: max(x, slope*x) for 0 < slope < 1
    o_ref[0] = jnp.maximum(acc, NEG_SLOPE * acc).astype(o_ref.dtype)


def _round_up(x: int, m: int) -> int:
    return (x + m - 1) // m * m


def _plan_cols(n_cols: int, n_batch_grid: int):
    """Pick (tile, padded_cols, n_tiles).

    Tiles are lane-dense multiples of 128, balanced, capped at MAX_TILE (VMEM
    bound), and the total grid gets >= 2 steps whenever the column count allows
    so both v7x TensorCores have work.
    """
    cols128 = _round_up(n_cols, 128)
    n_tiles = pl.cdiv(cols128, MAX_TILE)
    if n_batch_grid * n_tiles == 1 and cols128 >= 256:
        n_tiles = 2  # megacore: give the second TensorCore a tile on v7x
    tile = _round_up(pl.cdiv(cols128, n_tiles), 128)
    return tile, tile * n_tiles, n_tiles


def em_feature_forward(x, weight, bias):
    """x: (N, 1, H, W) f32, weight: (32, 1, 6, 8), bias: (32,) -> (N, 32, 1, W//8)."""
    N, C, H, W = x.shape
    assert C == 1 and H >= CHANS and W >= KW
    Wout = W // KW  # PyTorch Conv2d floor semantics: trailing W % 8 columns are dropped

    xs = x[:, 0, :CHANS, :Wout * KW].reshape(N, CHANS, Wout, KW)   # (N, 6, Wout, 8)
    w2 = weight.reshape(F1, KDIM).astype(jnp.float32)              # (32, 48)
    b2 = bias.reshape(F1, 1).astype(jnp.float32)                   # (32, 1)

    small = Wout < 128
    if small:
        # Flatten (N, Wout) into one lane axis: patches (1, 48, N*Wout).
        cols = N * Wout
        n_batch = 1
        patches = xs.transpose(1, 3, 0, 2).reshape(1, KDIM, cols)
    else:
        # Per-batch layout: patches (N, 48, Wout); kernel writes NCHW directly.
        cols = Wout
        n_batch = N
        patches = xs.transpose(0, 1, 3, 2).reshape(N, KDIM, Wout)

    tile, padded, n_tiles = _plan_cols(cols, n_batch)
    if padded != cols:
        patches = jnp.pad(patches, ((0, 0), (0, 0), (0, padded - cols)))

    grid = (n_batch, n_tiles)
    cost = pl.CostEstimate(
        flops=2 * n_batch * padded * (KDIM * F1 + F1),
        transcendentals=0,
        bytes_accessed=4 * (patches.size + w2.size + b2.size + n_batch * F1 * padded),
    )

    out3 = pl.pallas_call(
        _conv_mm_kernel,
        out_shape=jax.ShapeDtypeStruct((n_batch, F1, padded), jnp.float32),
        grid=grid,
        in_specs=[
            pl.BlockSpec((1, KDIM, tile), lambda n, j: (n, 0, j)),  # patch tile
            pl.BlockSpec((F1, KDIM), lambda n, j: (0, 0)),          # resident weight
            pl.BlockSpec((F1, 1), lambda n, j: (0, 0)),             # resident bias
        ],
        out_specs=pl.BlockSpec((1, F1, tile), lambda n, j: (n, 0, j)),
        compiler_params=pltpu.CompilerParams(
            dimension_semantics=("parallel", "parallel"),
            # Let XLA fuse the im2col rearrangement into the kernel's input
            # instead of materializing it in HBM (kernel is HBM-bound).
            allow_input_fusion=[True, False, False],
        ),
        cost_estimate=cost,
    )(patches, w2, b2)

    if small:
        # Tiny output: un-flatten (32, N*Wout) -> (N, 32, Wout); negligible cost.
        out = out3[0, :, :cols].reshape(F1, N, Wout).transpose(1, 0, 2)
    else:
        out = out3[:, :, :Wout]                                     # drop width padding

    # TODO(synk): nn.Dropout is identity in eval mode; training-mode random
    # masking/scaling is not implemented here.
    return out[:, :, None, :]                                       # (N, 32, 1, Wout)


if __name__ == "__main__":
    key = jax.random.PRNGKey(0)
    kx1, kx2, kwt, kb = jax.random.split(key, 4)

    # Deterministic synthetic Conv2d(1, 32, (6, 8)) parameters.
    fan_in = 1 * CHANS * KW
    bound = 1.0 / (fan_in ** 0.5)
    weight = jax.random.uniform(kwt, (F1, 1, CHANS, KW),
                                minval=-bound, maxval=bound, dtype=jnp.float32)
    bias = jax.random.uniform(kb, (F1,), minval=-bound, maxval=bound,
                              dtype=jnp.float32)

    fwd = jax.jit(em_feature_forward)

    def reference(xin):
        n, _, _, w = xin.shape
        wout = w // KW
        xs = xin[:, 0, :CHANS, :wout * KW].reshape(n, CHANS, wout, KW)
        ref = jnp.einsum("nhwk,fhk->nfw", xs, weight[:, 0],
                         precision=jax.lax.Precision.HIGHEST) + bias[None, :, None]
        return jnp.where(ref > 0, ref, NEG_SLOPE * ref)[:, :, None, :]

    # Small-width regime: the module's nominal shape (LayerNorm(32*16) => Wout=16).
    x1 = jax.random.normal(kx1, (2, 1, 8, 128), dtype=jnp.float32)
    out1 = fwd(x1, weight, bias)
    jax.block_until_ready(out1)
    assert out1.shape == (2, F1, 1, 16)
    assert jnp.allclose(out1, reference(x1), atol=2e-2, rtol=2e-2), "small-regime mismatch"

    # Wide regime: exercises the per-batch, lane-dense tiled path.
    x2 = jax.random.normal(kx2, (2, 1, 8, 2048), dtype=jnp.float32)
    out2 = fwd(x2, weight, bias)
    jax.block_until_ready(out2)
    assert out2.shape == (2, F1, 1, 256)
    assert jnp.allclose(out2, reference(x2), atol=2e-2, rtol=2e-2), "wide-regime mismatch"

    print("KERNEL_OK")
</pallas_src>

<mosaic_0001>
module attributes {stable_mosaic.version = 11 : i64} {
  func.func @_conv_mm_kernel(%arg0: i32, %arg1: i32, %arg2: memref<1x48x128xf32, #tpu.memory_space<vmem>>, %arg3: memref<32x48xf32, #tpu.memory_space<vmem>>, %arg4: memref<32x1xf32, #tpu.memory_space<vmem>>, %arg5: memref<1x32x128xf32, #tpu.memory_space<vmem>>) attributes {dimension_semantics = [#tpu.dimension_semantics<parallel>, #tpu.dimension_semantics<parallel>], iteration_bounds = array<i64: 1, 1>, scalar_prefetch = 0 : i64, scratch_operands = 0 : i64, tpu.core_type = #tpu.core_type<tc>, window_params = [{transform_indices = @transform_0, window_bounds = array<i64: 1, 48, 128>}, {pipeline_mode = #tpu.pipeline_mode<synchronous>, transform_indices = @transform_1, window_bounds = array<i64: 32, 48>}, {pipeline_mode = #tpu.pipeline_mode<synchronous>, transform_indices = @transform_2, window_bounds = array<i64: 32, 1>}, {transform_indices = @transform_3, window_bounds = array<i64: 1, 32, 128>}]} {
    %c0 = arith.constant 0 : index
    %c0_0 = arith.constant 0 : index
    %0 = vector.load %arg3[%c0, %c0_0] : memref<32x48xf32, #tpu.memory_space<vmem>>, vector<32x48xf32>
    %c0_1 = arith.constant 0 : index
    %c0_2 = arith.constant 0 : index
    %c0_3 = arith.constant 0 : index
    %1 = vector.load %arg2[%c0_1, %c0_2, %c0_3] : memref<1x48x128xf32, #tpu.memory_space<vmem>>, vector<1x48x128xf32>
    %2 = vector.shape_cast %1 : vector<1x48x128xf32> to vector<48x128xf32>
    %cst = arith.constant dense<0.000000e+00> : vector<32x128xf32>
    %3 = tpu.matmul %0, %2, %cst {dimension_numbers = #tpu.dot_dimension_numbers<[1], [0], [0], [1], [0, 0, 1, 1], [], []>} : vector<32x48xf32>, vector<48x128xf32>, vector<32x128xf32> -> vector<32x128xf32>
    %c0_4 = arith.constant 0 : index
    %c0_5 = arith.constant 0 : index
    %4 = vector.load %arg4[%c0_4, %c0_5] : memref<32x1xf32, #tpu.memory_space<vmem>>, vector<32x1xf32>
    %5 = vector.broadcast %4 : vector<32x1xf32> to vector<32x128xf32>
    %6 = arith.addf %3, %5 : vector<32x128xf32>
    %cst_6 = arith.constant 0.00999999977 : f32
    %7 = vector.broadcast %cst_6 : f32 to vector<32x128xf32>
    %8 = arith.mulf %7, %6 : vector<32x128xf32>
    %9 = arith.maximumf %6, %8 : vector<32x128xf32>
    %c0_7 = arith.constant 0 : index
    %c0_8 = arith.constant 0 : index
    %c0_9 = arith.constant 0 : index
    %10 = vector.load %arg5[%c0_7, %c0_8, %c0_9] : memref<1x32x128xf32, #tpu.memory_space<vmem>>, vector<1x32x128xf32>
    %11 = vector.shape_cast %10 : vector<1x32x128xf32> to vector<32x128xf32>
    %12 = vector.shape_cast %9 : vector<32x128xf32> to vector<1x32x128xf32>
    tpu.vector_store %arg5[%c0_7, %c0_8, %c0_9], %12 {strides = array<i32>} : memref<1x32x128xf32, #tpu.memory_space<vmem>>, vector<1x32x128xf32>,
    return
  }
  func.func @transform_0(%arg0: i32, %arg1: i32) -> (i32, i32, i32) {
    %c0_i32 = arith.constant 0 : i32
    %c0_i32_0 = arith.constant 0 : i32
    return %arg0, %c0_i32, %arg1 : i32, i32, i32
  }
  func.func @transform_1(%arg0: i32, %arg1: i32) -> (i32, i32) {
    %c0_i32 = arith.constant 0 : i32
    %c0_i32_0 = arith.constant 0 : i32
    %c0_i32_1 = arith.constant 0 : i32
    return %c0_i32, %c0_i32_0 : i32, i32
  }
  func.func @transform_2(%arg0: i32, %arg1: i32) -> (i32, i32) {
    %c0_i32 = arith.constant 0 : i32
    %c0_i32_0 = arith.constant 0 : i32
    %c0_i32_1 = arith.constant 0 : i32
    return %c0_i32, %c0_i32_0 : i32, i32
  }
  func.func @transform_3(%arg0: i32, %arg1: i32) -> (i32, i32, i32) {
    %c0_i32 = arith.constant 0 : i32
    %c0_i32_0 = arith.constant 0 : i32
    return %arg0, %c0_i32, %arg1 : i32, i32, i32
  }
}

</mosaic_0001>

<bundles_post_ra>
// kernel: squeeze.2
= control target key start
LH: loop header
LB: loop body
LE: loop exit
PB: predicated region body
PF: predicated region fallthrough
CT: control target
= control target key end

     0   :  { %vm61_vm0 = vcmask 1047556   ;;  %s553_s18 = smov 120   ;;  %s554_s19 = smov 104   ;;  %vm31_vm1 = vcmask 64512   ;;  %s979_s0 = inlined_call_operand.vmem [shape: f32[2,1,6,128], index: 0, kind: input, shape index: {}]   ;;  %s980_s1 = inlined_call_operand.vmem [shape: f32[2,6,16,8], index: 1, kind: output, shape index: {}]  }
   0x1   :  { %v437_v0 = vld [vmem:[%s979_s0 + $0xa] sm:$0x3]  ;;  %v438_v1 = vld [vmem:[%s979_s0 + $0x8] sm:$0x3]  ;;  %v439_v2 = vld [vmem:[%s979_s0 + $0x6] sm:$0x3] }
   0x2   :  { %8 = vst [vmem:[#allocation0 + $0x28] sm:$0x3] %v437_v0  ;;  %13 = vst [vmem:[#allocation0 + $0x20] sm:$0x3] %v438_v1  ;;  %v440_v3 = vld [vmem:[%s979_s0 + $0x4] sm:$0x3] }
   0x3   :  { %18 = vst [vmem:[#allocation0 + $0x18] sm:$0x3] %v439_v2  ;;  %23 = vst [vmem:[#allocation0 + $0x10] sm:$0x3] %v440_v3  ;;  %v441_v4 = vld [vmem:[%s979_s0 + $0x2] sm:$0x3] }
   0x4   :  { %v28_v5 = vld [vmem:[%s979_s0] sm:$0x3]  ;;  %27 = vst [vmem:[#allocation0 + $0x8] sm:$0x3] %v441_v4  ;;  %s552_s0 = smov 112   ;;  %s555_s20 = smov 96  }
   0x5   :  { %29 = vst [vmem:[#allocation0] sm:$0x3] %v28_v5  ;;  %s556_s21 = smov 88   ;;  %s557_s22 = smov 80  }
   0x6   :  { %s558_s23 = smov 72   ;;  %s559_s24 = smov 64  }
   0x7   :  { %s560_s25 = smov 56   ;;  %s561_s26 = smov 48  }
   0x8   :  { %s562_s27 = smov 40   ;;  %s563_s5 = smov 32  }
   0x9   :  { %v100_v6 = vld.sshfl [vmem:[#allocation0 + $0x20] sm:$0xff pattern:$0x99999810]   ;;  %s564_s12 = smov 24   ;;  %s565_s13 = smov 16  }
   0xa   :  { %101 = vrot.lane.b32.xlu1 %v100_v6, %s552_s0  ;;  %76 = vrot.lane.b32.xlu0 %v100_v6, %s553_s18  ;;  %v60_v7 = vld.sshfl [vmem:[#allocation0 + $0x10] sm:$0xff pattern:$0x98100000]   ;;  %v49_v14 = vld [vmem:[#allocation0 + $0x20] sm:$0x3]   ;;  %s566_s14 = smov 8  }
   0xb   :  { %v34_v11 = vld [vmem:[#allocation0 + $0x8] sm:$0x3]   ;;  %v39_v12 = vld [vmem:[#allocation0 + $0x10] sm:$0x3]   ;;  %v44_v13 = vld [vmem:[#allocation0 + $0x18] sm:$0x3]  }
   0xc   :  { %v58_v8 = vld.sshfl [vmem:[#allocation0] sm:$0xff pattern:$0x99999810]   ;;  %442 = vst.msk [vmem:[%s980_s1 + $0x20] ss:$16 sm:$0x3] %vm31_vm1, %v34_v11  }
   0xd   :  { %v62_v9 = vsel %vm61_vm0, %v60_v7, %v58_v8  ;;  %v30_v10 = vld [vmem:[#allocation0] sm:$0x3]   ;;  %443 = vst.msk [vmem:[%s980_s1 + $0x40] ss:$16 sm:$0x3] %vm31_vm1, %v39_v12  }
   0xe   :  { %126 = vrot.lane.b32.xlu1 %v100_v6, %s554_s19  ;;  %63 = vrot.lane.b32.xlu0 %v62_v9, %s553_s18  ;;  %32 = vst.msk [vmem:[%s980_s1] ss:$16 sm:$0x3] %vm31_vm1, %v30_v10   ;;  %v54_v15 = vld [vmem:[#allocation0 + $0x28] sm:$0x3]  }
   0xf   :  { %444 = vst.msk [vmem:[%s980_s1 + $0x60] ss:$16 sm:$0x3] %vm31_vm1, %v44_v13   ;;  %445 = vst.msk [vmem:[%s980_s1 + $0x80] ss:$16 sm:$0x3] %vm31_vm1, %v49_v14  }
  0x10   :  { %446 = vst.msk [vmem:[%s980_s1 + $0xa0] ss:$16 sm:$0x3] %vm31_vm1, %v54_v15  }
  0x12   :  { %88 = vrot.lane.b32.xlu1 %v62_v9, %s552_s0  ;;  %113 = vrot.lane.b32.xlu0 %v62_v9, %s554_s19 }
  0x16   :  { %151 = vrot.lane.b32.xlu1 %v100_v6, %s555_s20  ;;  %138 = vrot.lane.b32.xlu0 %v62_v9, %s555_s20 }
  0x1a   :  { %176 = vrot.lane.b32.xlu1 %v100_v6, %s556_s21  ;;  %163 = vrot.lane.b32.xlu0 %v62_v9, %s556_s21 }
  0x1e   :  { %201 = vrot.lane.b32.xlu1 %v100_v6, %s557_s22  ;;  %188 = vrot.lane.b32.xlu0 %v62_v9, %s557_s22 }
  0x22   :  { %226 = vrot.lane.b32.xlu1 %v100_v6, %s558_s23  ;;  %213 = vrot.lane.b32.xlu0 %v62_v9, %s558_s23 }
  0x26   :  { %251 = vrot.lane.b32.xlu1 %v100_v6, %s559_s24  ;;  %238 = vrot.lane.b32.xlu0 %v62_v9, %s559_s24 }
  0x2a   :  { %276 = vrot.lane.b32.xlu1 %v100_v6, %s560_s25  ;;  %263 = vrot.lane.b32.xlu0 %v62_v9, %s560_s25 }
  0x2e   :  { %301 = vrot.lane.b32.xlu1 %v100_v6, %s561_s26  ;;  %288 = vrot.lane.b32.xlu0 %v62_v9, %s561_s26 }
  0x32   :  { %326 = vrot.lane.b32.xlu1 %v100_v6, %s562_s27  ;;  %313 = vrot.lane.b32.xlu0 %v62_v9, %s562_s27 }
  0x36   :  { %351 = vrot.lane.b32.xlu1 %v100_v6, %s563_s5  ;;  %338 = vrot.lane.b32.xlu0 %v62_v9, %s563_s5 }
  0x3a   :  { %376 = vrot.lane.b32.xlu1 %v100_v6, %s564_s12  ;;  %363 = vrot.lane.b32.xlu0 %v62_v9, %s564_s12 }
  0x3e   :  { %401 = vrot.lane.b32.xlu1 %v100_v6, %s565_s13  ;;  %388 = vrot.lane.b32.xlu0 %v62_v9, %s565_s13 }
  0x42   :  { %426 = vrot.lane.b32.xlu1 %v100_v6, %s566_s14  ;;  %413 = vrot.lane.b32.xlu0 %v62_v9, %s566_s14 }
  0x7c   :  { %v102_v16 = vpop.permute.xlu1 %101   ;;  %v77_v17 = vpop.permute.xlu0 %76  }
  0x7d   :  { %457 = vst.msk [vmem:[%s980_s1 + $0x82] ss:$16 sm:$0x3] %vm31_vm1, %v102_v16   ;;  %458 = vst.msk [vmem:[%s980_s1 + $0x82] ss:$16 sm:$0xc] %vm31_vm1, %v102_v16  }
  0x7e   :  { %451 = vst.msk [vmem:[%s980_s1 + $0x81] ss:$16 sm:$0x3] %vm31_vm1, %v77_v17   ;;  %452 = vst.msk [vmem:[%s980_s1 + $0x81] ss:$16 sm:$0xc] %vm31_vm1, %v77_v17  }
  0x80   :  { %v127_v18 = vpop.permute.xlu1 %126   ;;  %v64_v19 = vpop.permute.xlu0 %63  }
  0x81   :  { %463 = vst.msk [vmem:[%s980_s1 + $0x83] ss:$16 sm:$0x3] %vm31_vm1, %v127_v18   ;;  %464 = vst.msk [vmem:[%s980_s1 + $0x83] ss:$16 sm:$0xc] %vm31_vm1, %v127_v18  }
  0x82   :  { %447 = vst.msk [vmem:[%s980_s1 + $0x1] ss:$16 sm:$0x3] %vm31_vm1, %v64_v19   ;;  %448 = vst.msk [vmem:[%s980_s1 + $0x1] ss:$16 sm:$0xc] %vm31_vm1, %v64_v19  }
  0x83   :  { %449 = vst.msk [vmem:[%s980_s1 + $0x1] ss:$16 sm:$0x30] %vm31_vm1, %v64_v19   ;;  %450 = vst.msk [vmem:[%s980_s1 + $0x1] ss:$16 sm:$0xc0] %vm31_vm1, %v64_v19  }
  0x84   :  { %v89_v20 = vpop.permute.xlu1 %88   ;;  %v114_v21 = vpop.permute.xlu0 %113  }
  0x85   :  { %453 = vst.msk [vmem:[%s980_s1 + $0x2] ss:$16 sm:$0x3] %vm31_vm1, %v89_v20   ;;  %454 = vst.msk [vmem:[%s980_s1 + $0x2] ss:$16 sm:$0xc] %vm31_vm1, %v89_v20  }
  0x86   :  { %455 = vst.msk [vmem:[%s980_s1 + $0x2] ss:$16 sm:$0x30] %vm31_vm1, %v89_v20   ;;  %456 = vst.msk [vmem:[%s980_s1 + $0x2] ss:$16 sm:$0xc0] %vm31_vm1, %v89_v20  }
  0x87   :  { %459 = vst.msk [vmem:[%s980_s1 + $0x3] ss:$16 sm:$0x3] %vm31_vm1, %v114_v21   ;;  %460 = vst.msk [vmem:[%s980_s1 + $0x3] ss:$16 sm:$0xc] %vm31_vm1, %v114_v21  }
  0x88   :  { %461 = vst.msk [vmem:[%s980_s1 + $0x3] ss:$16 sm:$0x30] %vm31_vm1, %v114_v21   ;;  %462 = vst.msk [vmem:[%s980_s1 + $0x3] ss:$16 sm:$0xc0] %vm31_vm1, %v114_v21   ;;  %v152_v22 = vpop.permute.xlu1 %151   ;;  %v139_v23 = vpop.permute.xlu0 %138  }
  0x89   :  { %469 = vst.msk [vmem:[%s980_s1 + $0x84] ss:$16 sm:$0x3] %vm31_vm1, %v152_v22   ;;  %470 = vst.msk [vmem:[%s980_s1 + $0x84] ss:$16 sm:$0xc] %vm31_vm1, %v152_v22  }
  0x8a   :  { %465 = vst.msk [vmem:[%s980_s1 + $0x4] ss:$16 sm:$0x3] %vm31_vm1, %v139_v23   ;;  %466 = vst.msk [vmem:[%s980_s1 + $0x4] ss:$16 sm:$0xc] %vm31_vm1, %v139_v23  }
  0x8b   :  { %467 = vst.msk [vmem:[%s980_s1 + $0x4] ss:$16 sm:$0x30] %vm31_vm1, %v139_v23   ;;  %468 = vst.msk [vmem:[%s980_s1 + $0x4] ss:$16 sm:$0xc0] %vm31_vm1, %v139_v23  }
  0x8c   :  { %v177_v24 = vpop.permute.xlu1 %176   ;;  %v164_v25 = vpop.permute.xlu0 %163  }
  0x8d   :  { %475 = vst.msk [vmem:[%s980_s1 + $0x85] ss:$16 sm:$0x3] %vm31_vm1, %v177_v24   ;;  %476 = vst.msk [vmem:[%s980_s1 + $0x85] ss:$16 sm:$0xc] %vm31_vm1, %v177_v24  }
  0x8e   :  { %471 = vst.msk [vmem:[%s980_s1 + $0x5] ss:$16 sm:$0x3] %vm31_vm1, %v164_v25   ;;  %472 = vst.msk [vmem:[%s980_s1 + $0x5] ss:$16 sm:$0xc] %vm31_vm1, %v164_v25  }
  0x8f   :  { %473 = vst.msk [vmem:[%s980_s1 + $0x5] ss:$16 sm:$0x30] %vm31_vm1, %v164_v25   ;;  %474 = vst.msk [vmem:[%s980_s1 + $0x5] ss:$16 sm:$0xc0] %vm31_vm1, %v164_v25  }
  0x90   :  { %v202_v26 = vpop.permute.xlu1 %201   ;;  %v189_v27 = vpop.permute.xlu0 %188  }
  0x91   :  { %481 = vst.msk [vmem:[%s980_s1 + $0x86] ss:$16 sm:$0x3] %vm31_vm1, %v202_v26   ;;  %482 = vst.msk [vmem:[%s980_s1 + $0x86] ss:$16 sm:$0xc] %vm31_vm1, %v202_v26  }
  0x92   :  { %477 = vst.msk [vmem:[%s980_s1 + $0x6] ss:$16 sm:$0x3] %vm31_vm1, %v189_v27   ;;  %478 = vst.msk [vmem:[%s980_s1 + $0x6] ss:$16 sm:$0xc] %vm31_vm1, %v189_v27  }
  0x93   :  { %479 = vst.msk [vmem:[%s980_s1 + $0x6] ss:$16 sm:$0x30] %vm31_vm1, %v189_v27   ;;  %480 = vst.msk [vmem:[%s980_s1 + $0x6] ss:$16 sm:$0xc0] %vm31_vm1, %v189_v27  }
  0x94   :  { %v227_v28 = vpop.permute.xlu1 %226   ;;  %v214_v29 = vpop.permute.xlu0 %213  }
  0x95   :  { %487 = vst.msk [vmem:[%s980_s1 + $0x87] ss:$16 sm:$0x3] %vm31_vm1, %v227_v28   ;;  %488 = vst.msk [vmem:[%s980_s1 + $0x87] ss:$16 sm:$0xc] %vm31_vm1, %v227_v28  }
  0x96   :  { %483 = vst.msk [vmem:[%s980_s1 + $0x7] ss:$16 sm:$0x3] %vm31_vm1, %v214_v29   ;;  %484 = vst.msk [vmem:[%s980_s1 + $0x7] ss:$16 sm:$0xc] %vm31_vm1, %v214_v29  }
  0x97   :  { %485 = vst.msk [vmem:[%s980_s1 + $0x7] ss:$16 sm:$0x30] %vm31_vm1, %v214_v29   ;;  %486 = vst.msk [vmem:[%s980_s1 + $0x7] ss:$16 sm:$0xc0] %vm31_vm1, %v214_v29  }
  0x98   :  { %v252_v30 = vpop.permute.xlu1 %251   ;;  %v239_v31 = vpop.permute.xlu0 %238  }
  0x99   :  { %493 = vst.msk [vmem:[%s980_s1 + $0x88] ss:$16 sm:$0x3] %vm31_vm1, %v252_v30   ;;  %494 = vst.msk [vmem:[%s980_s1 + $0x88] ss:$16 sm:$0xc] %vm31_vm1, %v252_v30  }
  0x9a   :  { %489 = vst.msk [vmem:[%s980_s1 + $0x8] ss:$16 sm:$0x3] %vm31_vm1, %v239_v31   ;;  %490 = vst.msk [vmem:[%s980_s1 + $0x8] ss:$16 sm:$0xc] %vm31_vm1, %v239_v31  }
  0x9b   :  { %491 = vst.msk [vmem:[%s980_s1 + $0x8] ss:$16 sm:$0x30] %vm31_vm1, %v239_v31   ;;  %492 = vst.msk [vmem:[%s980_s1 + $0x8] ss:$16 sm:$0xc0] %vm31_vm1, %v239_v31  }
  0x9c   :  { %v277_v32 = vpop.permute.xlu1 %276   ;;  %v264_v33 = vpop.permute.xlu0 %263  }
  0x9d   :  { %499 = vst.msk [vmem:[%s980_s1 + $0x89] ss:$16 sm:$0x3] %vm31_vm1, %v277_v32   ;;  %500 = vst.msk [vmem:[%s980_s1 + $0x89] ss:$16 sm:$0xc] %vm31_vm1, %v277_v32  }
  0x9e   :  { %495 = vst.msk [vmem:[%s980_s1 + $0x9] ss:$16 sm:$0x3] %vm31_vm1, %v264_v33   ;;  %496 = vst.msk [vmem:[%s980_s1 + $0x9] ss:$16 sm:$0xc] %vm31_vm1, %v264_v33  }
  0x9f   :  { %497 = vst.msk [vmem:[%s980_s1 + $0x9] ss:$16 sm:$0x30] %vm31_vm1, %v264_v33   ;;  %498 = vst.msk [vmem:[%s980_s1 + $0x9] ss:$16 sm:$0xc0] %vm31_vm1, %v264_v33  }
  0xa0   :  { %v302_v34 = vpop.permute.xlu1 %301   ;;  %v289_v35 = vpop.permute.xlu0 %288  }
  0xa1   :  { %505 = vst.msk [vmem:[%s980_s1 + $0x8a] ss:$16 sm:$0x3] %vm31_vm1, %v302_v34   ;;  %506 = vst.msk [vmem:[%s980_s1 + $0x8a] ss:$16 sm:$0xc] %vm31_vm1, %v302_v34  }
  0xa2   :  { %501 = vst.msk [vmem:[%s980_s1 + $0xa] ss:$16 sm:$0x3] %vm31_vm1, %v289_v35   ;;  %502 = vst.msk [vmem:[%s980_s1 + $0xa] ss:$16 sm:$0xc] %vm31_vm1, %v289_v35  }
  0xa3   :  { %503 = vst.msk [vmem:[%s980_s1 + $0xa] ss:$16 sm:$0x30] %vm31_vm1, %v289_v35   ;;  %504 = vst.msk [vmem:[%s980_s1 + $0xa] ss:$16 sm:$0xc0] %vm31_vm1, %v289_v35  }
  0xa4   :  { %v327_v36 = vpop.permute.xlu1 %326   ;;  %v314_v37 = vpop.permute.xlu0 %313  }
  0xa5   :  { %511 = vst.msk [vmem:[%s980_s1 + $0x8b] ss:$16 sm:$0x3] %vm31_vm1, %v327_v36   ;;  %512 = vst.msk [vmem:[%s980_s1 + $0x8b] ss:$16 sm:$0xc] %vm31_vm1, %v327_v36  }
  0xa6   :  { %507 = vst.msk [vmem:[%s980_s1 + $0xb] ss:$16 sm:$0x3] %vm31_vm1, %v314_v37   ;;  %508 = vst.msk [vmem:[%s980_s1 + $0xb] ss:$16 sm:$0xc] %vm31_vm1, %v314_v37  }
  0xa7   :  { %509 = vst.msk [vmem:[%s980_s1 + $0xb] ss:$16 sm:$0x30] %vm31_vm1, %v314_v37   ;;  %510 = vst.msk [vmem:[%s980_s1 + $0xb] ss:$16 sm:$0xc0] %vm31_vm1, %v314_v37  }
  0xa8   :  { %v352_v38 = vpop.permute.xlu1 %351   ;;  %v339_v39 = vpop.permute.xlu0 %338  }
  0xa9   :  { %517 = vst.msk [vmem:[%s980_s1 + $0x8c] ss:$16 sm:$0x3] %vm31_vm1, %v352_v38   ;;  %518 = vst.msk [vmem:[%s980_s1 + $0x8c] ss:$16 sm:$0xc] %vm31_vm1, %v352_v38  }
  0xaa   :  { %513 = vst.msk [vmem:[%s980_s1 + $0xc] ss:$16 sm:$0x3] %vm31_vm1, %v339_v39   ;;  %514 = vst.msk [vmem:[%s980_s1 + $0xc] ss:$16 sm:$0xc] %vm31_vm1, %v339_v39  }
  0xab   :  { %515 = vst.msk [vmem:[%s980_s1 + $0xc] ss:$16 sm:$0x30] %vm31_vm1, %v339_v39   ;;  %516 = vst.msk [vmem:[%s980_s1 + $0xc] ss:$16 sm:$0xc0] %vm31_vm1, %v339_v39  }
  0xac   :  { %v377_v40 = vpop.permute.xlu1 %376   ;;  %v364_v41 = vpop.permute.xlu0 %363  }
  0xad   :  { %523 = vst.msk [vmem:[%s980_s1 + $0x8d] ss:$16 sm:$0x3] %vm31_vm1, %v377_v40   ;;  %524 = vst.msk [vmem:[%s980_s1 + $0x8d] ss:$16 sm:$0xc] %vm31_vm1, %v377_v40  }
  0xae   :  { %519 = vst.msk [vmem:[%s980_s1 + $0xd] ss:$16 sm:$0x3] %vm31_vm1, %v364_v41   ;;  %520 = vst.msk [vmem:[%s980_s1 + $0xd] ss:$16 sm:$0xc] %vm31_vm1, %v364_v41  }
  0xaf   :  { %521 = vst.msk [vmem:[%s980_s1 + $0xd] ss:$16 sm:$0x30] %vm31_vm1, %v364_v41   ;;  %522 = vst.msk [vmem:[%s980_s1 + $0xd] ss:$16 sm:$0xc0] %vm31_vm1, %v364_v41  }
  0xb0   :  { %v402_v42 = vpop.permute.xlu1 %401   ;;  %v389_v43 = vpop.permute.xlu0 %388  }
  0xb1   :  { %529 = vst.msk [vmem:[%s980_s1 + $0x8e] ss:$16 sm:$0x3] %vm31_vm1, %v402_v42   ;;  %530 = vst.msk [vmem:[%s980_s1 + $0x8e] ss:$16 sm:$0xc] %vm31_vm1, %v402_v42  }
  0xb2   :  { %525 = vst.msk [vmem:[%s980_s1 + $0xe] ss:$16 sm:$0x3] %vm31_vm1, %v389_v43   ;;  %526 = vst.msk [vmem:[%s980_s1 + $0xe] ss:$16 sm:$0xc] %vm31_vm1, %v389_v43  }
  0xb3   :  { %527 = vst.msk [vmem:[%s980_s1 + $0xe] ss:$16 sm:$0x30] %vm31_vm1, %v389_v43   ;;  %528 = vst.msk [vmem:[%s980_s1 + $0xe] ss:$16 sm:$0xc0] %vm31_vm1, %v389_v43  }
  0xb4   :  { %v427_v44 = vpop.permute.xlu1 %426   ;;  %v414_v45 = vpop.permute.xlu0 %413  }
  0xb5   :  { %535 = vst.msk [vmem:[%s980_s1 + $0x8f] ss:$16 sm:$0x3] %vm31_vm1, %v427_v44   ;;  %536 = vst.msk [vmem:[%s980_s1 + $0x8f] ss:$16 sm:$0xc] %vm31_vm1, %v427_v44  }
  0xb6   :  { %531 = vst.msk [vmem:[%s980_s1 + $0xf] ss:$16 sm:$0x3] %vm31_vm1, %v414_v45   ;;  %532 = vst.msk [vmem:[%s980_s1 + $0xf] ss:$16 sm:$0xc] %vm31_vm1, %v414_v45  }
  0xb7   :  { %533 = vst.msk [vmem:[%s980_s1 + $0xf] ss:$16 sm:$0x30] %vm31_vm1, %v414_v45   ;;  %534 = vst.msk [vmem:[%s980_s1 + $0xf] ss:$16 sm:$0xc0] %vm31_vm1, %v414_v45  }

// kernel: em_feature_forward.2
= control target key start
LH: loop header
LB: loop body
LE: loop exit
PB: predicated region body
PF: predicated region fallthrough
CT: control target
= control target key end

     0   :  { %v17_v1 = vlaneseq  ;;  %vm108_vm0 = vcmask 392192   ;;  %v280_v5 = vmov 0   ;;  %s367_s0 = inlined_call_operand.vmem [shape: f32[32,48], index: 0, kind: input, shape index: {}]   ;;  %s368_s1 = inlined_call_operand.vmem [shape: f32[32,1], index: 1, kind: input, shape index: {}]   ;;  %s369_s2 = inlined_call_operand.vmem [shape: f32[1,48,32], index: 2, kind: input, shape index: {}]   ;;  %s370_s3 = inlined_call_operand.<no memory space> [shape: f32[], index: 3, kind: input, shape index: {}]   ;;  %s371_s4 = inlined_call_operand.vmem [shape: f32[1,32,128], index: 4, kind: output, shape index: {}]  }
   0x1   :  { %v9_v0 = vstv %s370_s3  ;;  %v16_v2 = vld [vmem:[%s369_s2] sm:$0xff]  ;;  %v222_v3 = vld [vmem:[%s369_s2 + $0x8] sm:$0xff]  ;;  %v223_v4 = vld [vmem:[%s369_s2 + $0x10] sm:$0xff]  ;;  %279 = vset.pattern.permute.xlu1 %v280_v5  ;;  %278 = vset.pattern.permute.xlu0 %v280_v5 }
   0x2   :  { %v18_v6 = vand.u32 127, %v17_v1  ;;  %v224_v7 = vld [vmem:[%s369_s2 + $0x18] sm:$0xff]  ;;  %v74_v8 = vld [vmem:[%s367_s0] sm:$0xff]  ;;  %v76_v9 = vld [vmem:[%s367_s0 + $0x10] sm:$0xff] }
   0x3   :  { %253 = vmatprep.mubr.msk.f32.mxu0 %vm108_vm0, %v74_v8  ;;  %256 = vmatprep.mubr.msk.f32.mxu1 %vm108_vm0, %v76_v9  ;;  %v86_v10 = vld [vmem:[%s368_s1 + $0x10] sm:$0xff]  ;;  %v84_v11 = vld [vmem:[%s368_s1] sm:$0xff]  ;;  %v226_v13 = vld [vmem:[%s369_s2 + $0x28] sm:$0xff] }
   0x4   :  { %vm20_vm1 = vcmp.lt.s32.totalorder %v18_v6, 32  ;;  %v225_v12 = vld [vmem:[%s369_s2 + $0x20] sm:$0xff]  ;;  %100 = vperm.xlu1 %279, %v86_v10   ;;  %90 = vperm.xlu0 %278, %v84_v11   ;;  %v87_v22 = vld [vmem:[%s368_s1 + $0x18] sm:$0xff]  ;;  %v85_v23 = vld [vmem:[%s368_s1 + $0x8] sm:$0xff] }
   0x5   :  { %v21_v14 = vsel %vm20_vm1, %v16_v2, %v9_v0  ;;  %v30_v15 = vsel %vm20_vm1, %v222_v3, %v9_v0  ;;  %v40_v16 = vsel %vm20_vm1, %v223_v4, %v9_v0  ;;  %v50_v17 = vsel %vm20_vm1, %v224_v7, %v9_v0  ;;  %v75_v25 = vld [vmem:[%s367_s0 + $0x8] sm:$0xff]  ;;  %v77_v26 = vld [vmem:[%s367_s0 + $0x18] sm:$0xff] }
   0x6   :  { %v259_v18 = vpack.c.bf16 %v30_v15, %v21_v14  ;;  %v263_v19 = vpack.c.bf16 %v50_v17, %v40_v16  ;;  %v60_v20 = vsel %vm20_vm1, %v225_v12, %v9_v0  ;;  %v70_v21 = vsel %vm20_vm1, %v226_v13, %v9_v0 }
   0x7   :  { %v267_v24 = vpack.c.bf16 %v70_v21, %v60_v20 }
   0x8   :  { %260 = vmatprep.subr.bf16.mxu0 %v259_v18  ;;  %271 = vmatprep.subr.bf16.mxu1 %v259_v18 }
   0x9   :  { %262 = vmatpush3.bf16.msra.mxu0 %v259_v18  ;;  %274 = vmatpush3.bf16.msra.mxu1 %v259_v18 }
   0xa   :  { %264 = vmatprep.subr.bf16.mxu0 %v263_v19  ;;  %272 = vmatprep.subr.bf16.mxu1 %v263_v19 }
   0xb   :  { %105 = vperm.xlu1 %279, %v87_v22   ;;  %95 = vperm.xlu0 %278, %v85_v23  }
   0xd   :  { %266 = vmatpush3.bf16.msra.mxu0 %v263_v19  ;;  %275 = vmatpush3.bf16.msra.mxu1 %v263_v19 }
   0xe   :  { %268 = vmatprep.subr.bf16.mxu0 %v267_v24  ;;  %273 = vmatprep.subr.bf16.mxu1 %v267_v24 }
  0x11   :  { %270 = vmatpush3.bf16.msra.mxu0 %v267_v24  ;;  %276 = vmatpush3.bf16.msra.mxu1 %v267_v24 }
  0x14   :  { %254 = vmatmul.mubr.msk.f32.vlgmr.msra.gmra.mrb[0].mxu0 %vm108_vm0, %v75_v25  ;;  %257 = vmatmul.mubr.msk.f32.vlgmr.msra.gmra.mrb[0].mxu1 %vm108_vm0, %v77_v26 }
  0x83   :  { %v101_v27 = vpop.permute.xlu1 %100  ;;  %v91_v28 = vpop.permute.xlu0 %90 }
  0x8a   :  { %v106_v29 = vpop.permute.xlu1 %105  ;;  %v96_v30 = vpop.permute.xlu0 %95 }
  0xe7   :  { %v255_v31 = vpop.f32.mrb[0].mxu0  ;;  %v258_v32 = vpop.f32.mrb[0].mxu1 }
  0xe8   :  { %v193_v33 = vadd.f32 %v255_v31, %v96_v30  ;;  %v203_v34 = vadd.f32 %v258_v32, %v106_v29  ;;  %v187_v35 = vpop.f32.mrb[1].mxu0  ;;  %v197_v36 = vpop.f32.mrb[1].mxu1 }
  0xe9   :  { %v188_v37 = vadd.f32 %v187_v35, %v91_v28  ;;  %v198_v38 = vadd.f32 %v197_v36, %v101_v27 }
  0xea   :  { %v207_v39 = vmul.f32 0.01, %v193_v33  ;;  %v209_v40 = vmul.f32 0.01, %v203_v34 }
  0xeb   :  { %v206_v41 = vmul.f32 0.01, %v188_v37  ;;  %v208_v42 = vmul.f32 0.01, %v198_v38 }
  0xec   :  { %v211_v43 = vmax.f32 %v193_v33, %v207_v39  ;;  %v213_v44 = vmax.f32 %v203_v34, %v209_v40 }
  0xed   :  { %v210_v45 = vmax.f32 %v188_v37, %v206_v41  ;;  %v212_v46 = vmax.f32 %v198_v38, %v208_v42 }
  0xee   :  { %215 = vst [vmem:[%s371_s4 + $0x8] sm:$0xff] %v211_v43  ;;  %217 = vst [vmem:[%s371_s4 + $0x18] sm:$0xff] %v213_v44 }
  0xef   :  { %214 = vst [vmem:[%s371_s4] sm:$0xff] %v210_v45  ;;  %216 = vst [vmem:[%s371_s4 + $0x10] sm:$0xff] %v212_v46 }

</bundles_post_ra>
